<compile_context>
chip_gen: v6e
topology: v6e:2x2x1
jax: 0.10.0
libtpu: 0.0.40
codegen_flags: <defaults>
</compile_context>

<pallas_src>
import jax
import jax.numpy as jnp
from jax import lax
from jax.experimental import pallas as pl
from jax.experimental.pallas import tpu as pltpu


def _pick_tm(npatch, cap):
    """Patches-per-grid-step.

    If the whole per-image patch count fits in one tile, use it (a full-extent
    block dim is always layout-legal).  Otherwise use a multiple of 128 so the
    tile is legal both as a sublane dim (patches input) and as a lane dim
    (conv-layout output); the partial last block is masked by Pallas.
    """
    if npatch <= cap:
        return npatch
    return max(128, (cap // 128) * 128)


def _tokens_kernel(p_ref, w_ref, b_ref, o_ref):
    # p_ref: (1, tm, K) patches; w_ref: (K, E) resident weight;
    # b_ref: (1, E) f32 bias; o_ref: (1, tm, E).
    acc = jnp.dot(p_ref[0], w_ref[...], preferred_element_type=jnp.float32)
    o_ref[0] = (acc + b_ref[...]).astype(o_ref.dtype)


def _conv_kernel(w_ref, p_ref, b_ref, o_ref):
    # Transposed GEMM: w_ref: (E, K) resident; p_ref: (1, K, tm) patches^T;
    # b_ref: (E, 1) f32 bias; o_ref: (1, E, tm)  -> NCHW output is a free reshape.
    acc = jnp.dot(w_ref[...], p_ref[0], preferred_element_type=jnp.float32)
    o_ref[0] = (acc + b_ref[...]).astype(o_ref.dtype)


def patch_embed_naive(x, weight, bias, patch_size, *,
                      compute_dtype=jnp.bfloat16,
                      out_dtype=None,
                      tm=256,
                      tokens_out=False):
    """LV-ViT PatchEmbedNaive forward.

    x: (B, C, H, W); weight: (E, C, p, p); bias: (E,).
    Returns (B, E, H/p, W/p) if tokens_out is False (nn.Conv2d layout),
            (B, nH*nW, E)    if tokens_out is True (token layout).
    Output dtype defaults to compute_dtype (bf16).
    """
    if out_dtype is None:
        out_dtype = compute_dtype
    B, C, H, W = x.shape
    E = weight.shape[0]
    p = patch_size
    assert H % p == 0 and W % p == 0, "image size must be divisible by patch size"
    nH, nW = H // p, W // p
    npatch = nH * nW
    K = C * p * p

    tm = _pick_tm(npatch, tm)
    grid = (B, pl.cdiv(npatch, tm))

    c_it = jnp.dtype(compute_dtype).itemsize
    o_it = jnp.dtype(out_dtype).itemsize

    # im2col: cast FIRST so the relayout pass moves bf16, not f32, bytes.
    # (b, c, nh, kh, nw, kw) split is a free (layout-preserving) reshape.
    xc = x.astype(compute_dtype).reshape(B, C, nH, p, nW, p)

    if tokens_out:
        # patches[b, nh*nW+nw, (c,kh,kw)]  -- matches Conv2d weight flattening.
        patches = xc.transpose(0, 2, 4, 1, 3, 5).reshape(B, npatch, K)
        w2d = weight.reshape(E, K).T.astype(compute_dtype)        # (K, E)
        b2d = bias.astype(jnp.float32).reshape(1, E)
        kernel = _tokens_kernel
        operands = (patches, w2d, b2d)
        in_specs = [
            pl.BlockSpec((1, tm, K), lambda b, i: (b, i, 0)),
            pl.BlockSpec((K, E), lambda b, i: (0, 0)),            # resident
            pl.BlockSpec((1, E), lambda b, i: (0, 0)),            # resident
        ]
        out_shape = jax.ShapeDtypeStruct((B, npatch, E), out_dtype)
        out_spec = pl.BlockSpec((1, tm, E), lambda b, i: (b, i, 0))
    else:
        # patches^T[b, (c,kh,kw), nh*nW+nw]: kernel computes W @ patches^T and
        # writes (B, E, npatch) directly (no post-kernel NCHW transpose).
        patches = xc.transpose(0, 1, 3, 5, 2, 4).reshape(B, K, npatch)
        w2d = weight.reshape(E, K).astype(compute_dtype)          # (E, K)
        b2d = bias.astype(jnp.float32).reshape(E, 1)
        kernel = _conv_kernel
        operands = (w2d, patches, b2d)
        in_specs = [
            pl.BlockSpec((E, K), lambda b, i: (0, 0)),            # resident
            pl.BlockSpec((1, K, tm), lambda b, i: (b, 0, i)),
            pl.BlockSpec((E, 1), lambda b, i: (0, 0)),            # resident
        ]
        out_shape = jax.ShapeDtypeStruct((B, E, npatch), out_dtype)
        out_spec = pl.BlockSpec((1, E, tm), lambda b, i: (b, 0, i))

    # Per-step VMEM: double-buffered patches / output tiles, one resident
    # weight + bias copy, f32 accumulator headroom.  Capped at 32 MiB (safe on
    # v7x's 64 MiB VMEM, conservative-but-fine on v5e/v6e's 128 MiB).
    per_step = (2 * tm * K * c_it          # patches tile (double-buffered)
                + K * E * c_it             # resident weight
                + 2 * E * 4                # bias
                + 2 * tm * E * o_it        # output tile (double-buffered)
                + tm * E * 4)              # f32 accumulator
    vmem_limit = int(min(max(per_step + (2 << 20), 16 << 20), 32 << 20))

    cost = pl.CostEstimate(
        flops=2 * B * npatch * K * E,
        transcendentals=0,
        bytes_accessed=(B * npatch * K * c_it    # patches, read once
                        + K * E * c_it           # weight, resident: read once
                        + E * 4                  # bias
                        + B * npatch * E * o_it))  # output, written once

    out = pl.pallas_call(
        kernel,
        out_shape=out_shape,
        grid_spec=pltpu.PrefetchScalarGridSpec(
            num_scalar_prefetch=0,
            grid=grid,
            in_specs=in_specs,
            out_specs=out_spec,
        ),
        compiler_params=pltpu.CompilerParams(
            dimension_semantics=("parallel", "parallel"),
            vmem_limit_bytes=vmem_limit,
        ),
        cost_estimate=cost,
    )(*operands)

    if tokens_out:
        return out                              # (B, N, E)
    return out.reshape(B, E, nH, nW)            # free reshape -> Conv2d layout


if __name__ == "__main__":
    # Small shapes consistent with the module: img_size=16, patch_size=4,
    # in_chans=4, embed_dim=32, batch=2.
    B, C, H, W = 2, 4, 16, 16
    p = 4
    E = 32

    key = jax.random.PRNGKey(0)
    kx, kw, kb = jax.random.split(key, 3)
    x = jax.random.normal(kx, (B, C, H, W), dtype=jnp.float32)
    fan_in = C * p * p
    bound = 1.0 / (fan_in ** 0.5)
    weight = jax.random.uniform(kw, (E, C, p, p), jnp.float32, -bound, bound)
    bias = jax.random.uniform(kb, (E,), jnp.float32, -bound, bound)

    # Reference: strided conv == nn.Conv2d(kernel=stride=p), highest precision.
    ref = lax.conv_general_dilated(
        x, weight, window_strides=(p, p), padding="VALID",
        dimension_numbers=("NCHW", "OIHW", "NCHW"),
        precision=lax.Precision.HIGHEST) + bias[None, :, None, None]

    # f32 compute path: validates tiling / layout / flattening order.
    out_f32 = patch_embed_naive(x, weight, bias, p,
                                compute_dtype=jnp.float32,
                                out_dtype=jnp.float32)
    out_f32 = jax.block_until_ready(out_f32)
    assert out_f32.shape == (B, E, H // p, W // p)
    assert jnp.allclose(out_f32, ref, atol=5e-3, rtol=5e-3)

    # Default fast path: bf16 MXU operands, bf16 output, Conv2d layout.
    out_bf16 = patch_embed_naive(x, weight, bias, p)
    out_bf16 = jax.block_until_ready(out_bf16)
    assert out_bf16.shape == (B, E, H // p, W // p)
    assert out_bf16.dtype == jnp.bfloat16
    assert jnp.allclose(out_bf16.astype(jnp.float32), ref, atol=5e-2, rtol=5e-2)

    # Token-layout fast path: (B, N, E) directly (what the ViT consumer wants).
    out_tok = patch_embed_naive(x, weight, bias, p, tokens_out=True)
    out_tok = jax.block_until_ready(out_tok)
    ref_tok = ref.reshape(B, E, -1).transpose(0, 2, 1)
    assert out_tok.shape == (B, (H // p) * (W // p), E)
    assert jnp.allclose(out_tok.astype(jnp.float32), ref_tok, atol=5e-2, rtol=5e-2)

    print("KERNEL_OK")
</pallas_src>

<mosaic_0001>
module attributes {stable_mosaic.version = 11 : i64} {
  func.func @_conv_kernel(%arg0: i32, %arg1: i32, %arg2: memref<32x64xf32, #tpu.memory_space<vmem>>, %arg3: memref<1x64x16xf32, #tpu.memory_space<vmem>>, %arg4: memref<32x1xf32, #tpu.memory_space<vmem>>, %arg5: memref<1x32x16xf32, #tpu.memory_space<vmem>>) attributes {dimension_semantics = [#tpu.dimension_semantics<parallel>, #tpu.dimension_semantics<parallel>], iteration_bounds = array<i64: 2, 1>, scalar_prefetch = 0 : i64, scratch_operands = 0 : i64, tpu.core_type = #tpu.core_type<tc>, window_params = [{pipeline_mode = #tpu.pipeline_mode<synchronous>, transform_indices = @transform_0, window_bounds = array<i64: 32, 64>}, {transform_indices = @transform_1, window_bounds = array<i64: 1, 64, 16>}, {pipeline_mode = #tpu.pipeline_mode<synchronous>, transform_indices = @transform_2, window_bounds = array<i64: 32, 1>}, {transform_indices = @transform_3, window_bounds = array<i64: 1, 32, 16>}]} {
    %c0 = arith.constant 0 : index
    %c0_0 = arith.constant 0 : index
    %0 = vector.load %arg2[%c0, %c0_0] : memref<32x64xf32, #tpu.memory_space<vmem>>, vector<32x64xf32>
    %c0_1 = arith.constant 0 : index
    %c0_2 = arith.constant 0 : index
    %c0_3 = arith.constant 0 : index
    %1 = vector.load %arg3[%c0_1, %c0_2, %c0_3] : memref<1x64x16xf32, #tpu.memory_space<vmem>>, vector<1x64x16xf32>
    %2 = vector.shape_cast %1 : vector<1x64x16xf32> to vector<64x16xf32>
    %cst = arith.constant dense<0.000000e+00> : vector<32x16xf32>
    %3 = tpu.matmul %0, %2, %cst {dimension_numbers = #tpu.dot_dimension_numbers<[1], [0], [0], [1], [0, 0, 1, 1], [], []>} : vector<32x64xf32>, vector<64x16xf32>, vector<32x16xf32> -> vector<32x16xf32>
    %c0_4 = arith.constant 0 : index
    %c0_5 = arith.constant 0 : index
    %4 = vector.load %arg4[%c0_4, %c0_5] : memref<32x1xf32, #tpu.memory_space<vmem>>, vector<32x1xf32>
    %5 = vector.broadcast %4 : vector<32x1xf32> to vector<32x16xf32>
    %6 = arith.addf %3, %5 : vector<32x16xf32>
    %c0_6 = arith.constant 0 : index
    %c0_7 = arith.constant 0 : index
    %c0_8 = arith.constant 0 : index
    %7 = vector.load %arg5[%c0_6, %c0_7, %c0_8] : memref<1x32x16xf32, #tpu.memory_space<vmem>>, vector<1x32x16xf32>
    %8 = vector.shape_cast %7 : vector<1x32x16xf32> to vector<32x16xf32>
    %9 = vector.shape_cast %6 : vector<32x16xf32> to vector<1x32x16xf32>
    tpu.vector_store %arg5[%c0_6, %c0_7, %c0_8], %9 {strides = array<i32>} : memref<1x32x16xf32, #tpu.memory_space<vmem>>, vector<1x32x16xf32>,
    return
  }
  func.func @transform_0(%arg0: i32, %arg1: i32) -> (i32, i32) {
    %c0_i32 = arith.constant 0 : i32
    %c0_i32_0 = arith.constant 0 : i32
    %c0_i32_1 = arith.constant 0 : i32
    return %c0_i32, %c0_i32_0 : i32, i32
  }
  func.func @transform_1(%arg0: i32, %arg1: i32) -> (i32, i32, i32) {
    %c0_i32 = arith.constant 0 : i32
    %c0_i32_0 = arith.constant 0 : i32
    return %arg0, %c0_i32, %arg1 : i32, i32, i32
  }
  func.func @transform_2(%arg0: i32, %arg1: i32) -> (i32, i32) {
    %c0_i32 = arith.constant 0 : i32
    %c0_i32_0 = arith.constant 0 : i32
    %c0_i32_1 = arith.constant 0 : i32
    return %c0_i32, %c0_i32_0 : i32, i32
  }
  func.func @transform_3(%arg0: i32, %arg1: i32) -> (i32, i32, i32) {
    %c0_i32 = arith.constant 0 : i32
    %c0_i32_0 = arith.constant 0 : i32
    return %arg0, %c0_i32, %arg1 : i32, i32, i32
  }
}

</mosaic_0001>

<bundles_post_ra>
// kernel: tpu_custom_call.1
= control target key start
LH: loop header
LB: loop body
LE: loop exit
PB: predicated region body
PF: predicated region fallthrough
CT: control target
= control target key end

     0   :  { %s563_s12 = smov 0   ;;  %s565_s13 = smov 0   ;;  %s638_s0 = inlined_call_operand.vmem [shape: f32[32,64], index: 0, kind: input, shape index: {}]   ;;  %s639_s1 = inlined_call_operand.vmem [shape: f32[2,64,16], index: 1, kind: input, shape index: {}]   ;;  %s640_s2 = inlined_call_operand.vmem [shape: f32[32,1], index: 2, kind: input, shape index: {}]   ;;  %s641_s3 = inlined_call_operand.vmem [shape: f32[2,32,16], index: 3, kind: output, shape index: {}]  }
   0x1   :  { %s567_s14 = smov 0  }
   0x2 LB: > { %s25_s15 = sadd.s32 1, %s536_s13  ;;  %p428_p0 = scmp.ge.s32.totalorder %s540_s14, 1  ;;  %s540_s14 = sphi %s567_s14, %s13_s14   ;;  %s536_s13 = sphi %s565_s13, %s643_s13   ;;  %s532_s12 = sphi %s563_s12, %s642_s12  }
   0x3   : > { %p27_p1 = scmp.ge.s32.totalorder %s25_s15, 2  ;;  %p156_p2 = scmp.lt.s32.totalorder %s540_s14, 3 }
   0x5   : > { %s645_s15 = smov (%p27_p1, %s25_s15), 0  ;;  %p157_p3 = pnand %p428_p0, %p156_p2 }
   0x6   : > { %p186_p4 = scmp.lt.s32.totalorder (!%p157_p3), %s532_s12, 1 }
   0x7   : > { %160 = sbr.rel (%p157_p3) target bundleno = 230 (0xe6), region = 32 }
   0xc   : > { %v202_v0 = vld [vmem:[%s638_s0] sm:$0xff]  ;;  %vm238_vm0 = vcmask 523264   ;;  %v204_v1 = vld [vmem:[%s638_s0 + $0x10] sm:$0xff]  ;;  %s647_s12 = smov (!%p186_p4, %s532_s12), 1  ;;  %v542_v4 = vmov 0   ;;  %v203_v13 = vld [vmem:[%s638_s0 + $0x8] sm:$0xff] }
   0xd   : > { %469 = vmatprep.mubr.msk.f32.mxu0 %vm238_vm0, %v202_v0  ;;  %472 = vmatprep.mubr.msk.f32.mxu1 %vm238_vm0, %v204_v1  ;;  %v216_v2 = vld [vmem:[%s640_s2 + $0x10] sm:$0xff]  ;;  %v214_v3 = vld [vmem:[%s640_s2] sm:$0xff]  ;;  %s439_s24 = sshll.u32 %s647_s12, 6  ;;  %v205_v14 = vld [vmem:[%s638_s0 + $0x18] sm:$0xff]  ;;  %s440_s9 = sshll.u32 %s647_s12, 5  ;;  %vm336_vm1 = vcmask 130048  }
   0xe   : > { %517 = vset.pattern.permute.xlu1 %v542_v4  ;;  %516 = vset.pattern.permute.xlu0 %v542_v4  ;;  %s601_s27 = scalar_lea.vmem %s639_s1, %s439_s24  ;;  %v217_v15 = vld [vmem:[%s640_s2 + $0x18] sm:$0xff]  ;;  %v215_v16 = vld [vmem:[%s640_s2 + $0x8] sm:$0xff]  ;;  %s201_s16 = scalar_lea.vmem %s641_s3, %s440_s9 }
   0xf   : > { %230 = vperm.xlu1 %517, %v216_v2   ;;  %220 = vperm.xlu0 %516, %v214_v3   ;;  %v213_v5 = vld [vmem:[%s601_s27 + $0x38] sm:$0xff]  ;;  %v212_v6 = vld [vmem:[%s601_s27 + $0x30] sm:$0xff]  ;;  %v211_v7 = vld [vmem:[%s601_s27 + $0x28] sm:$0xff] }
  0x10   : > { %453 = vmatprep.subr.mxu0 %v213_v5  ;;  %475 = vmatprep.subr.mxu1 %v213_v5  ;;  %v210_v8 = vld [vmem:[%s601_s27 + $0x20] sm:$0xff]  ;;  %v209_v9 = vld [vmem:[%s601_s27 + $0x18] sm:$0xff]  ;;  %v208_v10 = vld [vmem:[%s601_s27 + $0x10] sm:$0xff] }
  0x11   : > { %454 = vmatpush3.msra.mxu0 %v213_v5  ;;  %483 = vmatpush3.msra.mxu1 %v213_v5  ;;  %v207_v11 = vld [vmem:[%s601_s27 + $0x8] sm:$0xff]  ;;  %v206_v12 = vld [vmem:[%s601_s27] sm:$0xff] }
  0x12   : > { %455 = vmatprep.subr.mxu0 %v212_v6  ;;  %476 = vmatprep.subr.mxu1 %v212_v6 }
  0x13   : > { %456 = vmatpush3.msra.mxu0 %v212_v6  ;;  %484 = vmatpush3.msra.mxu1 %v212_v6 }
  0x14   : > { %457 = vmatprep.subr.mxu0 %v211_v7  ;;  %477 = vmatprep.subr.mxu1 %v211_v7 }
  0x15   : > { %458 = vmatpush3.msra.mxu0 %v211_v7  ;;  %485 = vmatpush3.msra.mxu1 %v211_v7 }
  0x16   : > { %459 = vmatprep.subr.mxu0 %v210_v8  ;;  %478 = vmatprep.subr.mxu1 %v210_v8 }
  0x17   : > { %460 = vmatpush3.msra.mxu0 %v210_v8  ;;  %486 = vmatpush3.msra.mxu1 %v210_v8 }
  0x18   : > { %461 = vmatprep.subr.mxu0 %v209_v9  ;;  %479 = vmatprep.subr.mxu1 %v209_v9 }
  0x19   : > { %462 = vmatpush3.msra.mxu0 %v209_v9  ;;  %487 = vmatpush3.msra.mxu1 %v209_v9 }
  0x1a   : > { %463 = vmatprep.subr.mxu0 %v208_v10  ;;  %480 = vmatprep.subr.mxu1 %v208_v10 }
  0x1b   : > { %464 = vmatpush3.msra.mxu0 %v208_v10  ;;  %488 = vmatpush3.msra.mxu1 %v208_v10 }
  0x1c   : > { %465 = vmatprep.subr.mxu0 %v207_v11  ;;  %481 = vmatprep.subr.mxu1 %v207_v11 }
  0x1d   : > { %466 = vmatpush3.msra.mxu0 %v207_v11  ;;  %489 = vmatpush3.msra.mxu1 %v207_v11 }
  0x1e   : > { %467 = vmatprep.subr.mxu0 %v206_v12  ;;  %482 = vmatprep.subr.mxu1 %v206_v12 }
  0x1f   : > { %468 = vmatpush3.msra.mxu0 %v206_v12  ;;  %490 = vmatpush3.msra.mxu1 %v206_v12 }
  0x20   : > { %470 = vmatmul.mubr.msk.f32.vlgmr.msra.gmra.mxu0 %vm238_vm0, %v203_v13  ;;  %473 = vmatmul.mubr.msk.f32.vlgmr.msra.gmra.mxu1 %vm238_vm0, %v205_v14 }
  0x21   : > { %235 = vperm.xlu1 %517, %v217_v15   ;;  %225 = vperm.xlu0 %516, %v215_v16  }
  0x8a   : > { %v231_v17 = vpop.permute.xlu1 %230  ;;  %v221_v18 = vpop.permute.xlu0 %220 }
  0x9c   : > { %v236_v19 = vpop.permute.xlu1 %235  ;;  %v226_v20 = vpop.permute.xlu0 %225 }
  0xe0   : > { %v471_v21 = vpop.f32.mrf.mxu0  ;;  %v474_v22 = vpop.f32.mrf.mxu1 }
  0xe1   : > { %v323_v23 = vadd.f32 %v471_v21, %v226_v20  ;;  %v333_v24 = vadd.f32 %v474_v22, %v236_v19 }
  0xe2   : > { %v317_v25 = vpop.f32.mrf.mxu0  ;;  %v327_v26 = vpop.f32.mrf.mxu1 }
  0xe3   : > { %338 = vst.msk [vmem:[%s201_s16 + $0x8] sm:$0xff] %vm336_vm1, %v323_v23  ;;  %340 = vst.msk [vmem:[%s201_s16 + $0x18] sm:$0xff] %vm336_vm1, %v333_v24  ;;  %v318_v27 = vadd.f32 %v317_v25, %v221_v18  ;;  %v328_v28 = vadd.f32 %v327_v26, %v231_v17 }
  0xe5   : > { %337 = vst.msk [vmem:[%s201_s16] sm:$0xff] %vm336_vm1, %v318_v27  ;;  %339 = vst.msk [vmem:[%s201_s16 + $0x10] sm:$0xff] %vm336_vm1, %v328_v28 }
  0xe6 PF: > { %s13_s14 = sadd.s32 1, %s540_s14   ;;  %s642_s12 = smov %s536_s13 }
  0xe7   : > { %p10_p5 = scmp.ge.s32.totalorder %s13_s14, 4   ;;  %s643_s13 = smov %s645_s15 }
  0xe9   :  { %12 = sbr.rel (!%p10_p5) target bundleno = 2 (0x2), region = 62 }

</bundles_post_ra>
